<compile_context>
chip_gen: v6e
topology: v6e:2x2x1
jax: 0.10.0
libtpu: 0.0.40
codegen_flags: <defaults>
</compile_context>

<pallas_src>
import numpy as np
import jax
import jax.numpy as jnp
from jax.experimental import pallas as pl
from jax.experimental.pallas import tpu as pltpu

WINDOW_SIZE = 11
SIGMA = 1.5
C1 = 0.01 ** 2
C2 = 0.03 ** 2


def _gaussian_1d_np(window_size: int, sigma: float) -> np.ndarray:
    """Matches pytorch_ssim.gaussian: normalized 1-D Gaussian."""
    xs = np.arange(window_size, dtype=np.float64)
    g = np.exp(-((xs - window_size // 2) ** 2) / (2.0 * sigma ** 2))
    return (g / g.sum()).astype(np.float32)


def _band_matrix_np(n: int, g1d: np.ndarray, window_size: int) -> np.ndarray:
    """A[i, k] = g1d[k - i + w//2] for |k-i| <= w//2 else 0 ('same' conv, zero pad)."""
    half = window_size // 2
    i = np.arange(n)[:, None]
    k = np.arange(n)[None, :]
    idx = k - i + half
    valid = (idx >= 0) & (idx < window_size)
    idx_c = np.clip(idx, 0, window_size - 1)
    return np.where(valid, g1d[idx_c], 0.0).astype(np.float32)


def _pick_c_block(C: int, H: int, W: int,
                  max_fused_lanes: int = 4096,
                  vmem_budget_bytes: int = 8 * 1024 * 1024) -> int:
    """Largest divisor of C whose fused intermediates stay comfortably in VMEM."""
    best = 1
    for cb in range(1, C + 1):
        if C % cb:
            continue
        fused_bytes = 4 * (5 * cb * H * W) * 4  # planes + y + y_wide + z (f32 equiv)
        if 5 * cb * W <= max_fused_lanes and fused_bytes <= vmem_budget_bytes:
            best = cb
    return best


def _make_kernel(weight_L1: float, c_blk: int, H: int, W: int, mm_dtype):
    P = 5 * c_blk          # number of blurred planes per grid step
    CW = c_blk * W
    num_px = float(H * CW)  # pixels in this grid step's ssim map

    def kernel(a_ref, bt_ref, p_ref, g_ref, out_ref):
        A = a_ref[...]                                        # (H, H)  mm_dtype
        Bt = bt_ref[...]                                      # (W, W)  mm_dtype
        p = p_ref[...].astype(jnp.float32).reshape(c_blk * H, W)
        g = g_ref[...].astype(jnp.float32).reshape(c_blk * H, W)

        # L1 term up front (only its sum is needed later).
        l1_part = jnp.sum(weight_L1 * jnp.abs(p - g), axis=(0, 1), keepdims=True)

        # 5 * c_blk planes stacked along sublanes: [p | g | p*p | g*g | p*g].
        planes = jnp.concatenate([p, g, p * p, g * g, p * g], axis=0)   # (P*H, W)

        # Fused column blur: ONE bf16 MXU matmul (f32 accumulation) for all planes.
        y = jnp.dot(planes.astype(mm_dtype), Bt,
                    preferred_element_type=jnp.float32)                 # (P*H, W)

        # Restack plane blocks onto the lane axis -> the row blur is one wide matmul.
        y_wide = jnp.concatenate(
            [y[b * H:(b + 1) * H, :] for b in range(P)], axis=1
        ).astype(mm_dtype)                                              # (H, P*W)
        z = jnp.dot(A, y_wide, preferred_element_type=jnp.float32)      # (H, P*W)

        # Slice the 5 blurred quantities (channels live along lanes, consistently).
        mu1 = z[:, 0 * CW:1 * CW]
        mu2 = z[:, 1 * CW:2 * CW]
        bpp = z[:, 2 * CW:3 * CW]
        bgg = z[:, 3 * CW:4 * CW]
        bpg = z[:, 4 * CW:5 * CW]

        mu1_sq = mu1 * mu1
        mu2_sq = mu2 * mu2
        mu1_mu2 = mu1 * mu2
        sigma1_sq = bpp - mu1_sq
        sigma2_sq = bgg - mu2_sq
        sigma12 = bpg - mu1_mu2

        num = (2.0 * mu1_mu2 + C1) * (2.0 * sigma12 + C2)
        den = (mu1_sq + mu2_sq + C1) * (sigma1_sq + sigma2_sq + C2)
        ssim_map = num * pl.reciprocal(den, approx=False)

        # sum(1 - ssim) == num_px - sum(ssim): skip one full-map subtract.
        ssim_sum = jnp.sum(ssim_map, axis=(0, 1), keepdims=True)
        out_ref[...] = l1_part + (num_px - ssim_sum)

    return kernel


def dssim_l1_loss(pred: jnp.ndarray, gt: jnp.ndarray,
                  weight_L1: float = 2.0,
                  use_bf16_matmul: bool = True) -> jnp.ndarray:
    assert pred.shape == gt.shape and pred.ndim == 4
    N, C, H, W = pred.shape
    mm_dtype = jnp.bfloat16 if use_bf16_matmul else jnp.float32

    g1d = _gaussian_1d_np(WINDOW_SIZE, SIGMA)
    A = jnp.asarray(_band_matrix_np(H, g1d, WINDOW_SIZE), dtype=mm_dtype)    # row blur
    Bt = jnp.asarray(_band_matrix_np(W, g1d, WINDOW_SIZE).T, dtype=mm_dtype)  # col blur^T

    c_blk = _pick_c_block(C, H, W)
    num_cb = C // c_blk

    kernel = _make_kernel(float(weight_L1), c_blk, H, W, mm_dtype)

    # Advisory cost estimate: 2 fused matmuls + ~30 elementwise flops per pixel.
    total_px = N * C * H * W
    cost = pl.CostEstimate(
        flops=int(10 * total_px * (H + W) + 30 * total_px),
        transcendentals=int(total_px),
        bytes_accessed=int(2 * total_px * pred.dtype.itemsize
                           + (H * H + W * W) * jnp.dtype(mm_dtype).itemsize
                           + N * num_cb * 4),
    )

    partials = pl.pallas_call(
        kernel,
        out_shape=jax.ShapeDtypeStruct((N, num_cb, 1, 1), jnp.float32),
        grid_spec=pltpu.PrefetchScalarGridSpec(
            num_scalar_prefetch=0,
            grid=(N, num_cb),
            in_specs=[
                pl.BlockSpec((H, H), lambda n, cb: (0, 0)),
                pl.BlockSpec((W, W), lambda n, cb: (0, 0)),
                pl.BlockSpec((pl.Squeezed(), c_blk, H, W),
                             lambda n, cb: (n, cb, 0, 0)),
                pl.BlockSpec((pl.Squeezed(), c_blk, H, W),
                             lambda n, cb: (n, cb, 0, 0)),
            ],
            out_specs=pl.BlockSpec((pl.Squeezed(), pl.Squeezed(), 1, 1),
                                   lambda n, cb: (n, cb, 0, 0)),
        ),
        compiler_params=pltpu.CompilerParams(
            dimension_semantics=("parallel", "parallel"),
            vmem_limit_bytes=64 * 1024 * 1024),
        cost_estimate=cost,
    )(A, Bt, pred, gt)   # inputs in native dtype; cast happens inside the kernel

    return jnp.sum(partials) / float(N * C * H * W)


# ----------------------------- references -----------------------------------

def _reference_f32(pred, gt, weight_L1=2.0):
    """Pure-JAX f32 reference with identical math (loose sanity check)."""
    N, C, H, W = pred.shape
    g1d = _gaussian_1d_np(WINDOW_SIZE, SIGMA)
    A = jnp.asarray(_band_matrix_np(H, g1d, WINDOW_SIZE))
    B = jnp.asarray(_band_matrix_np(W, g1d, WINDOW_SIZE))
    p = pred.astype(jnp.float32)
    g = gt.astype(jnp.float32)

    def blur(x):
        return jnp.einsum('ik,nckl,jl->ncij', A, x, B)

    mu1, mu2 = blur(p), blur(g)
    s1 = blur(p * p) - mu1 * mu1
    s2 = blur(g * g) - mu2 * mu2
    s12 = blur(p * g) - mu1 * mu2
    ssim_map = ((2 * mu1 * mu2 + C1) * (2 * s12 + C2)) / (
        (mu1 * mu1 + mu2 * mu2 + C1) * (s1 + s2 + C2))
    return jnp.mean(weight_L1 * jnp.abs(p - g) + (1.0 - ssim_map))


def _reference_matched(pred, gt, weight_L1=2.0):
    """Reference with the SAME bf16-matmul / f32-accumulate math as the kernel."""
    N, C, H, W = pred.shape
    g1d = _gaussian_1d_np(WINDOW_SIZE, SIGMA)
    A = jnp.asarray(_band_matrix_np(H, g1d, WINDOW_SIZE), dtype=jnp.bfloat16)
    Bt = jnp.asarray(_band_matrix_np(W, g1d, WINDOW_SIZE).T, dtype=jnp.bfloat16)
    p = pred.astype(jnp.float32)
    g = gt.astype(jnp.float32)

    def blur(x):  # column blur then row blur, both bf16 in / f32 out (like kernel)
        t = jnp.einsum('nchk,kw->nchw', x.astype(jnp.bfloat16), Bt,
                       preferred_element_type=jnp.float32)
        return jnp.einsum('ih,nchw->nciw', A, t.astype(jnp.bfloat16),
                          preferred_element_type=jnp.float32)

    mu1, mu2 = blur(p), blur(g)
    s1 = blur(p * p) - mu1 * mu1
    s2 = blur(g * g) - mu2 * mu2
    s12 = blur(p * g) - mu1 * mu2
    ssim_map = ((2 * mu1 * mu2 + C1) * (2 * s12 + C2)) / (
        (mu1 * mu1 + mu2 * mu2 + C1) * (s1 + s2 + C2))
    return jnp.mean(weight_L1 * jnp.abs(p - g) + (1.0 - ssim_map))


if __name__ == "__main__":
    key = jax.random.PRNGKey(0)
    k1, k2 = jax.random.split(key)
    pred = jax.random.uniform(k1, (2, 4, 16, 16), dtype=jnp.float32)
    gt = jax.random.uniform(k2, (2, 4, 16, 16), dtype=jnp.float32)

    loss_fn = jax.jit(lambda p, g: dssim_l1_loss(p, g, weight_L1=2.0))
    out = jax.block_until_ready(loss_fn(pred, gt))

    ref_matched = jax.block_until_ready(_reference_matched(pred, gt, weight_L1=2.0))
    ref_f32 = jax.block_until_ready(_reference_f32(pred, gt, weight_L1=2.0))

    # Tight structural check against the precision-matched reference.
    assert jnp.allclose(out, ref_matched, rtol=1e-4, atol=1e-5), (out, ref_matched)
    # Loose check against the full-f32 reference (bf16 matmul noise ~1e-3 rel).
    assert jnp.allclose(out, ref_f32, rtol=3e-2, atol=1e-3), (out, ref_f32)

    print("KERNEL_OK")
</pallas_src>

<mosaic_0001>
module attributes {stable_mosaic.version = 11 : i64} {
  func.func @kernel(%arg0: i32, %arg1: i32, %arg2: memref<16x16xbf16, #tpu.memory_space<vmem>>, %arg3: memref<16x16xbf16, #tpu.memory_space<vmem>>, %arg4: memref<1x4x16x16xf32, #tpu.memory_space<vmem>>, %arg5: memref<1x4x16x16xf32, #tpu.memory_space<vmem>>, %arg6: memref<1x1x1x1xf32, #tpu.memory_space<vmem>>) attributes {dimension_semantics = [#tpu.dimension_semantics<parallel>, #tpu.dimension_semantics<parallel>], iteration_bounds = array<i64: 2, 1>, scalar_prefetch = 0 : i64, scratch_operands = 0 : i64, tpu.core_type = #tpu.core_type<tc>, window_params = [{pipeline_mode = #tpu.pipeline_mode<synchronous>, transform_indices = @transform_0, window_bounds = array<i64: 16, 16>}, {pipeline_mode = #tpu.pipeline_mode<synchronous>, transform_indices = @transform_1, window_bounds = array<i64: 16, 16>}, {transform_indices = @transform_2, window_bounds = array<i64: 1, 4, 16, 16>}, {transform_indices = @transform_3, window_bounds = array<i64: 1, 4, 16, 16>}, {transform_indices = @transform_4, window_bounds = array<i64: 1, 1, 1, 1>}]} {
    %c0 = arith.constant 0 : index
    %c0_0 = arith.constant 0 : index
    %0 = vector.load %arg2[%c0, %c0_0] : memref<16x16xbf16, #tpu.memory_space<vmem>>, vector<16x16xbf16>
    %c0_1 = arith.constant 0 : index
    %c0_2 = arith.constant 0 : index
    %1 = vector.load %arg3[%c0_1, %c0_2] : memref<16x16xbf16, #tpu.memory_space<vmem>>, vector<16x16xbf16>
    %c0_3 = arith.constant 0 : index
    %c0_4 = arith.constant 0 : index
    %c0_5 = arith.constant 0 : index
    %c0_6 = arith.constant 0 : index
    %2 = vector.load %arg4[%c0_3, %c0_4, %c0_5, %c0_6] : memref<1x4x16x16xf32, #tpu.memory_space<vmem>>, vector<1x4x16x16xf32>
    %3 = vector.shape_cast %2 : vector<1x4x16x16xf32> to vector<4x16x16xf32>
    %4 = vector.shape_cast %3 : vector<4x16x16xf32> to vector<64x16xf32>
    %c0_7 = arith.constant 0 : index
    %c0_8 = arith.constant 0 : index
    %c0_9 = arith.constant 0 : index
    %c0_10 = arith.constant 0 : index
    %5 = vector.load %arg5[%c0_7, %c0_8, %c0_9, %c0_10] : memref<1x4x16x16xf32, #tpu.memory_space<vmem>>, vector<1x4x16x16xf32>
    %6 = vector.shape_cast %5 : vector<1x4x16x16xf32> to vector<4x16x16xf32>
    %7 = vector.shape_cast %6 : vector<4x16x16xf32> to vector<64x16xf32>
    %8 = arith.subf %4, %7 : vector<64x16xf32>
    %9 = math.absf %8 : vector<64x16xf32>
    %cst = arith.constant 2.000000e+00 : f32
    %10 = vector.broadcast %cst : f32 to vector<64x16xf32>
    %11 = arith.mulf %10, %9 : vector<64x16xf32>
    %12 = vector.shape_cast %11 : vector<64x16xf32> to vector<1x64x16xf32>
    %cst_11 = arith.constant dense<0.000000e+00> : vector<1xf32>
    %13 = vector.multi_reduction <add>, %12, %cst_11 [1, 2] : vector<1x64x16xf32> to vector<1xf32>
    %14 = vector.shape_cast %13 : vector<1xf32> to vector<1x1x1xf32>
    %15 = vector.extract %14[0, 0, 0] : f32 from vector<1x1x1xf32>
    %16 = vector.broadcast %15 : f32 to vector<1x1xf32>
    %17 = arith.mulf %4, %4 : vector<64x16xf32>
    %18 = arith.mulf %7, %7 : vector<64x16xf32>
    %19 = arith.mulf %4, %7 : vector<64x16xf32>
    %20 = tpu.concatenate %4, %7, %17, %18, %19 in 0 : vector<64x16xf32>, vector<64x16xf32>, vector<64x16xf32>, vector<64x16xf32>, vector<64x16xf32> -> vector<320x16xf32>
    %21 = arith.truncf %20 : vector<320x16xf32> to vector<320x16xbf16>
    %cst_12 = arith.constant dense<0.000000e+00> : vector<320x16xf32>
    %22 = tpu.matmul %21, %1, %cst_12 {dimension_numbers = #tpu.dot_dimension_numbers<[1], [0], [0], [1], [0, 0, 1, 1], [], []>} : vector<320x16xbf16>, vector<16x16xbf16>, vector<320x16xf32> -> vector<320x16xf32>
    %23 = vector.extract_strided_slice %22 {offsets = [0, 0], sizes = [16, 16], strides = [1, 1]} : vector<320x16xf32> to vector<16x16xf32>
    %24 = vector.extract_strided_slice %22 {offsets = [16, 0], sizes = [16, 16], strides = [1, 1]} : vector<320x16xf32> to vector<16x16xf32>
    %25 = vector.extract_strided_slice %22 {offsets = [32, 0], sizes = [16, 16], strides = [1, 1]} : vector<320x16xf32> to vector<16x16xf32>
    %26 = vector.extract_strided_slice %22 {offsets = [48, 0], sizes = [16, 16], strides = [1, 1]} : vector<320x16xf32> to vector<16x16xf32>
    %27 = vector.extract_strided_slice %22 {offsets = [64, 0], sizes = [16, 16], strides = [1, 1]} : vector<320x16xf32> to vector<16x16xf32>
    %28 = vector.extract_strided_slice %22 {offsets = [80, 0], sizes = [16, 16], strides = [1, 1]} : vector<320x16xf32> to vector<16x16xf32>
    %29 = vector.extract_strided_slice %22 {offsets = [96, 0], sizes = [16, 16], strides = [1, 1]} : vector<320x16xf32> to vector<16x16xf32>
    %30 = vector.extract_strided_slice %22 {offsets = [112, 0], sizes = [16, 16], strides = [1, 1]} : vector<320x16xf32> to vector<16x16xf32>
    %31 = vector.extract_strided_slice %22 {offsets = [128, 0], sizes = [16, 16], strides = [1, 1]} : vector<320x16xf32> to vector<16x16xf32>
    %32 = vector.extract_strided_slice %22 {offsets = [144, 0], sizes = [16, 16], strides = [1, 1]} : vector<320x16xf32> to vector<16x16xf32>
    %33 = vector.extract_strided_slice %22 {offsets = [160, 0], sizes = [16, 16], strides = [1, 1]} : vector<320x16xf32> to vector<16x16xf32>
    %34 = vector.extract_strided_slice %22 {offsets = [176, 0], sizes = [16, 16], strides = [1, 1]} : vector<320x16xf32> to vector<16x16xf32>
    %35 = vector.extract_strided_slice %22 {offsets = [192, 0], sizes = [16, 16], strides = [1, 1]} : vector<320x16xf32> to vector<16x16xf32>
    %36 = vector.extract_strided_slice %22 {offsets = [208, 0], sizes = [16, 16], strides = [1, 1]} : vector<320x16xf32> to vector<16x16xf32>
    %37 = vector.extract_strided_slice %22 {offsets = [224, 0], sizes = [16, 16], strides = [1, 1]} : vector<320x16xf32> to vector<16x16xf32>
    %38 = vector.extract_strided_slice %22 {offsets = [240, 0], sizes = [16, 16], strides = [1, 1]} : vector<320x16xf32> to vector<16x16xf32>
    %39 = vector.extract_strided_slice %22 {offsets = [256, 0], sizes = [16, 16], strides = [1, 1]} : vector<320x16xf32> to vector<16x16xf32>
    %40 = vector.extract_strided_slice %22 {offsets = [272, 0], sizes = [16, 16], strides = [1, 1]} : vector<320x16xf32> to vector<16x16xf32>
    %41 = vector.extract_strided_slice %22 {offsets = [288, 0], sizes = [16, 16], strides = [1, 1]} : vector<320x16xf32> to vector<16x16xf32>
    %42 = vector.extract_strided_slice %22 {offsets = [304, 0], sizes = [16, 16], strides = [1, 1]} : vector<320x16xf32> to vector<16x16xf32>
    %43 = tpu.concatenate %23, %24, %25, %26, %27, %28, %29, %30, %31, %32, %33, %34, %35, %36, %37, %38 in 1 : vector<16x16xf32>, vector<16x16xf32>, vector<16x16xf32>, vector<16x16xf32>, vector<16x16xf32>, vector<16x16xf32>, vector<16x16xf32>, vector<16x16xf32>, vector<16x16xf32>, vector<16x16xf32>, vector<16x16xf32>, vector<16x16xf32>, vector<16x16xf32>, vector<16x16xf32>, vector<16x16xf32>, vector<16x16xf32> -> vector<16x256xf32>
    %44 = tpu.concatenate %39, %40, %41, %42 in 1 : vector<16x16xf32>, vector<16x16xf32>, vector<16x16xf32>, vector<16x16xf32> -> vector<16x64xf32>
    %45 = tpu.concatenate %43, %44 in 1 : vector<16x256xf32>, vector<16x64xf32> -> vector<16x320xf32>
    %46 = arith.truncf %45 : vector<16x320xf32> to vector<16x320xbf16>
    %cst_13 = arith.constant dense<0.000000e+00> : vector<16x320xf32>
    %47 = tpu.matmul %0, %46, %cst_13 {dimension_numbers = #tpu.dot_dimension_numbers<[1], [0], [0], [1], [0, 0, 1, 1], [], []>} : vector<16x16xbf16>, vector<16x320xbf16>, vector<16x320xf32> -> vector<16x320xf32>
    %48 = vector.extract_strided_slice %47 {offsets = [0, 0], sizes = [16, 64], strides = [1, 1]} : vector<16x320xf32> to vector<16x64xf32>
    %49 = vector.extract_strided_slice %47 {offsets = [0, 64], sizes = [16, 64], strides = [1, 1]} : vector<16x320xf32> to vector<16x64xf32>
    %50 = vector.extract_strided_slice %47 {offsets = [0, 128], sizes = [16, 64], strides = [1, 1]} : vector<16x320xf32> to vector<16x64xf32>
    %51 = vector.extract_strided_slice %47 {offsets = [0, 192], sizes = [16, 64], strides = [1, 1]} : vector<16x320xf32> to vector<16x64xf32>
    %52 = vector.extract_strided_slice %47 {offsets = [0, 256], sizes = [16, 64], strides = [1, 1]} : vector<16x320xf32> to vector<16x64xf32>
    %53 = arith.mulf %48, %48 : vector<16x64xf32>
    %54 = arith.mulf %49, %49 : vector<16x64xf32>
    %55 = arith.mulf %48, %49 : vector<16x64xf32>
    %56 = arith.subf %50, %53 : vector<16x64xf32>
    %57 = arith.subf %51, %54 : vector<16x64xf32>
    %58 = arith.subf %52, %55 : vector<16x64xf32>
    %cst_14 = arith.constant 2.000000e+00 : f32
    %59 = vector.broadcast %cst_14 : f32 to vector<16x64xf32>
    %60 = arith.mulf %59, %55 : vector<16x64xf32>
    %cst_15 = arith.constant 9.99999974E-5 : f32
    %61 = vector.broadcast %cst_15 : f32 to vector<16x64xf32>
    %62 = arith.addf %60, %61 : vector<16x64xf32>
    %cst_16 = arith.constant 2.000000e+00 : f32
    %63 = vector.broadcast %cst_16 : f32 to vector<16x64xf32>
    %64 = arith.mulf %63, %58 : vector<16x64xf32>
    %cst_17 = arith.constant 8.99999984E-4 : f32
    %65 = vector.broadcast %cst_17 : f32 to vector<16x64xf32>
    %66 = arith.addf %64, %65 : vector<16x64xf32>
    %67 = arith.mulf %62, %66 : vector<16x64xf32>
    %68 = arith.addf %53, %54 : vector<16x64xf32>
    %cst_18 = arith.constant 9.99999974E-5 : f32
    %69 = vector.broadcast %cst_18 : f32 to vector<16x64xf32>
    %70 = arith.addf %68, %69 : vector<16x64xf32>
    %71 = arith.addf %56, %57 : vector<16x64xf32>
    %cst_19 = arith.constant 8.99999984E-4 : f32
    %72 = vector.broadcast %cst_19 : f32 to vector<16x64xf32>
    %73 = arith.addf %71, %72 : vector<16x64xf32>
    %74 = arith.mulf %70, %73 : vector<16x64xf32>
    %75 = tpu.reciprocal %74 : vector<16x64xf32> -> vector<16x64xf32>
    %76 = arith.mulf %67, %75 : vector<16x64xf32>
    %77 = vector.shape_cast %76 : vector<16x64xf32> to vector<1x16x64xf32>
    %cst_20 = arith.constant dense<0.000000e+00> : vector<1xf32>
    %78 = vector.multi_reduction <add>, %77, %cst_20 [1, 2] : vector<1x16x64xf32> to vector<1xf32>
    %79 = vector.shape_cast %78 : vector<1xf32> to vector<1x1x1xf32>
    %80 = vector.extract %79[0, 0, 0] : f32 from vector<1x1x1xf32>
    %81 = vector.broadcast %80 : f32 to vector<1x1xf32>
    %cst_21 = arith.constant 1.024000e+03 : f32
    %82 = vector.broadcast %cst_21 : f32 to vector<1x1xf32>
    %83 = arith.subf %82, %81 : vector<1x1xf32>
    %84 = arith.addf %16, %83 : vector<1x1xf32>
    %c0_22 = arith.constant 0 : index
    %c0_23 = arith.constant 0 : index
    %c0_24 = arith.constant 0 : index
    %c0_25 = arith.constant 0 : index
    %85 = vector.load %arg6[%c0_22, %c0_23, %c0_24, %c0_25] : memref<1x1x1x1xf32, #tpu.memory_space<vmem>>, vector<1x1x1x1xf32>
    %86 = vector.shape_cast %85 : vector<1x1x1x1xf32> to vector<1x1xf32>
    %87 = vector.shape_cast %84 : vector<1x1xf32> to vector<1x1x1x1xf32>
    tpu.vector_store %arg6[%c0_22, %c0_23, %c0_24, %c0_25], %87 {strides = array<i32>} : memref<1x1x1x1xf32, #tpu.memory_space<vmem>>, vector<1x1x1x1xf32>,
    return
  }
  func.func @transform_0(%arg0: i32, %arg1: i32) -> (i32, i32) {
    %c0_i32 = arith.constant 0 : i32
    %c0_i32_0 = arith.constant 0 : i32
    %c0_i32_1 = arith.constant 0 : i32
    return %c0_i32, %c0_i32_0 : i32, i32
  }
  func.func @transform_1(%arg0: i32, %arg1: i32) -> (i32, i32) {
    %c0_i32 = arith.constant 0 : i32
    %c0_i32_0 = arith.constant 0 : i32
    %c0_i32_1 = arith.constant 0 : i32
    return %c0_i32, %c0_i32_0 : i32, i32
  }
  func.func @transform_2(%arg0: i32, %arg1: i32) -> (i32, i32, i32, i32) {
    %c0_i32 = arith.constant 0 : i32
    %c0_i32_0 = arith.constant 0 : i32
    %c0_i32_1 = arith.constant 0 : i32
    return %arg0, %arg1, %c0_i32, %c0_i32_0 : i32, i32, i32, i32
  }
  func.func @transform_3(%arg0: i32, %arg1: i32) -> (i32, i32, i32, i32) {
    %c0_i32 = arith.constant 0 : i32
    %c0_i32_0 = arith.constant 0 : i32
    %c0_i32_1 = arith.constant 0 : i32
    return %arg0, %arg1, %c0_i32, %c0_i32_0 : i32, i32, i32, i32
  }
  func.func @transform_4(%arg0: i32, %arg1: i32) -> (i32, i32, i32, i32) {
    %c0_i32 = arith.constant 0 : i32
    %c0_i32_0 = arith.constant 0 : i32
    %c0_i32_1 = arith.constant 0 : i32
    return %arg0, %arg1, %c0_i32, %c0_i32_0 : i32, i32, i32, i32
  }
}

</mosaic_0001>

<bundles_post_ra>
// kernel: _lambda_.1
= control target key start
LH: loop header
LB: loop body
LE: loop exit
PB: predicated region body
PF: predicated region fallthrough
CT: control target
= control target key end

     0   :  { %9 = vsyncpa [#allocation3], 0  ;;  %s2097_s0 = inlined_call_operand.hbm [shape: bf16[16,16], index: 0, kind: input, shape index: {}, may-alias: {0,1}]   ;;  %s2098_s1 = inlined_call_operand.hbm [shape: bf16[16,16], index: 1, kind: input, shape index: {}, may-alias: {0,1}]   ;;  %s2099_s2 = inlined_call_operand.hbm [shape: f32[2,4,16,16], index: 2, kind: input, shape index: {}]   ;;  %s2100_s3 = inlined_call_operand.hbm [shape: f32[2,4,16,16], index: 3, kind: input, shape index: {}]   ;;  %s2101_s4 = inlined_call_operand.vmem [shape: f32[2,1,1,1], index: 4, kind: output, shape index: {}]  }
   0x1   :  { %10 = vsyncpa [#allocation5], 0  ;;  %s1669_s15 = smov 0   ;;  %s1671_s16 = smov 0  }
   0x2   :  { %s1673_s17 = smov 0   ;;  %s1675_s18 = smov 0  }
   0x3   :  { %s1677_s19 = smov 0   ;;  %s1679_s20 = smov 0  }
   0x4 LB: > { %s2103_s21 = sadd.s32 4294967295, %s1624_s20   ;;  %s79_s22 = sadd.s32 1, %s1612_s17  ;;  %s1624_s20 = sphi %s1679_s20, %s16_s20   ;;  %s1620_s19 = sphi %s1677_s19, %s2121_s19   ;;  %s1616_s18 = sphi %s1675_s18, %s2120_s18   ;;  %s1612_s17 = sphi %s1673_s17, %s2119_s17   ;;  %s1608_s16 = sphi %s1671_s16, %s2118_s16   ;;  %s1604_s15 = sphi %s1669_s15, %s2117_s15  }
   0x5   : > { %p86_p0 = scmp.ne.s32.totalorder %s1612_s17, %s1608_s16  ;;  %p87_p1 = scmp.eq.s32.totalorder %s1624_s20, 0 }
   0x6   : > { %p92_p2 = scmp.ne.s32.totalorder %s1608_s16, %s1604_s15  ;;  %p1705_p3 = scmp.eq.s32.totalorder %s2103_s21, 0 }
   0x7   : > { %p88_p4 = por %p87_p1, %p86_p0  ;;  %p1152_p5 = scmp.ge.s32.totalorder %s1624_s20, 1 }
   0x8   : > { %p1712_p6 = por %p1705_p3, %p92_p2  ;;  %p159_p7 = scmp.lt.s32.totalorder %s1624_s20, 3 }
   0x9   : > { %s1626_s26 = smov [#allocation2]   ;;  %p1300_p10 = scmp.lt.s32.totalorder %s1624_s20, 2 }
   0xa   : > { %s2108_s24 = scalar_select %p1712_p6, 1, 0 }
   0xb   : > { %p1717_p8 = pnand %p1152_p5, %p159_p7  ;;  %s171_s27 = sshll.u32 %s1626_s26, 4  ;;  %s172_s27 = int_to_ptr.vmem [resolvable:$true] %s171_s27 }
   0xc   : > { %p1730_p12 = pnand %p1300_p10, %p88_p4  ;;  %s28_s30 = sadd.s32 1, %s1620_s19 }
   0xd   : > { %p1284_p9 = pneg %p1717_p8  ;;  %s1469_s5 = scalar_lea.vmem %s172_s27, 128 }
   0xe   : > { %p1470_p0 = scmp.ne.s32.totalorder %s172_s27, %s1469_s5  ;;  %p1477_p5 = scmp.lt.s32.totalorder %s172_s27, %s172_s27 }
   0xf   : > { %p1726_p11 = pnand %p1284_p9, %p1705_p3  ;;  %p1478_p7 = scmp.lt.s32.totalorder %s1469_s5, %s1469_s5 }
  0x11   : > { %p1460_p13 = pneg %p1726_p11  ;;  %p1479_p9 = por %p1478_p7, %p1477_p5 }
  0x13   : > { %p1472_p1 = pnand %p1470_p0, %p1460_p13 }
  0x15   : > { %p1473_p2 = pneg %p1472_p1 }
  0x17   : > { %p1480_p6 = pnand %p1479_p9, %p1473_p2 }
  0x19   : > { %1483 = shalt.err (!%p1480_p6)
}
  0x1a   : > { %s2104_s6 = smov 64   ;;  %s2105_s7 = smov 4  }
  0x1b   : > { %1287 = dma.hbm_to_vmem [thread:$0]  (!%p1726_p11), %s2097_s0, 128, %s172_s27, [#allocation3], %s2104_s6, %s2104_s6, %s2105_s7  }
  0x1c   : > { %p30_p4 = scmp.ge.s32.totalorder %s28_s30, 2  ;;  %s198_s10 = sand.u32 1, %s1624_s20  }
  0x1d   : > { %s200_s11 = sand.u32 1, %s1612_s17   ;;  %s1193_s14 = sshll.u32 %s1620_s19, 10 }
  0x1e   : > { %s2123_s30 = smov (%p30_p4, %s28_s30), 0  ;;  %s1752_s12 = sshll.u32 %s200_s11, 6 }
  0x1f   : > { %s74_s13 = ssub.s32 %s1620_s19, %s2123_s30  ;;  %s211_s5 = scalar_lea.hbm %s2099_s2, %s1193_s14 }
  0x20   : > { %p77_p6 = scmp.eq.s32.totalorder %s74_s13, 0  ;;  %s202_s8 = scalar_lea.vmem [#allocation6], %s1752_s12 }
  0x21   : > { %s212_s9 = sshll.u32 %s202_s8, 4  ;;  %s1766_s21 = scalar_lea.sflag [#allocation3], %s198_s10  ;;  %s213_s9 = int_to_ptr.vmem [resolvable:$true] %s212_s9 }
  0x22   : > { %s1764_s27 = scalar_select %p77_p6, %s1612_s17, %s79_s22  }
  0x23   : > { %p1486_p10 = pneg %p1730_p12  ;;  %s1497_s11 = scalar_lea.vmem %s213_s9, 1024 }
  0x24   : > { %p1498_p0 = scmp.ne.s32.totalorder %s213_s9, %s1497_s11  ;;  %s1629_s13 = smov [#allocation6]  }
  0x25   : > { %s1502_s6 = sshll.u32 %s1629_s13, 4  ;;  %s1503_s6 = int_to_ptr.vmem [resolvable:$false] %s1502_s6 }
  0x26   : > { %p1500_p1 = pnand %p1498_p0, %p1486_p10  ;;  %s1504_s15 = scalar_lea.vmem %s1503_s6, 2048 }
  0x27   : > { %p1505_p5 = scmp.lt.s32.totalorder %s213_s9, %s1503_s6  ;;  %p1506_p7 = scmp.lt.s32.totalorder %s1504_s15, %s1497_s11 }
  0x28   : > { %p1501_p2 = pneg %p1500_p1 }
  0x29   : > { %p1507_p9 = por %p1506_p7, %p1505_p5 }
  0x2b   : > { %p1508_p4 = pnand %p1507_p9, %p1501_p2 }
  0x2d   : > { %1511 = shalt.err (!%p1508_p4)
}
  0x2e   : > { %s2106_s22 = smov 128   ;;  %s1631_s10 = smov 8  }
  0x2f   : > { %1294 = dma.hbm_to_vmem [thread:$0]  (!%p1730_p12), %s211_s5, 1024, %s213_s9, %s1766_s21, %s2106_s22, %s2106_s22, %s1631_s10  }
  0x30   : > { %s1632_s26 = smov [#allocation4]   ;;  %s1782_s6 = scalar_lea.hbm %s2100_s3, %s1193_s14 }
  0x31   : > { %s184_s8 = sshll.u32 %s1632_s26, 4  ;;  %s185_s8 = int_to_ptr.vmem [resolvable:$true] %s184_s8 }
  0x32   : > { %s1523_s11 = scalar_lea.vmem %s185_s8, 128  ;;  %p1531_p2 = scmp.lt.s32.totalorder %s185_s8, %s185_s8 }
  0x33   : > { %p1524_p6 = scmp.ne.s32.totalorder %s185_s8, %s1523_s11  ;;  %p1532_p5 = scmp.lt.s32.totalorder %s1523_s11, %s1523_s11 }
  0x35   : > { %p1526_p0 = pnand %p1524_p6, %p1460_p13  ;;  %p1533_p7 = por %p1532_p5, %p1531_p2 }
  0x37   : > { %p1527_p1 = pneg %p1526_p0 }
  0x39   : > { %p1534_p9 = pnand %p1533_p7, %p1527_p1 }
  0x3b   : > { %1537 = shalt.err (!%p1534_p9)
}
  0x3c   : > { %s2112_s5 = smov 4   ;;  %s2113_s9 = smov 64  }
  0x3d   : > { %1290 = dma.hbm_to_vmem [thread:$0]  (!%p1726_p11), %s2098_s1, 128, %s185_s8, [#allocation5], %s2113_s9, %s2113_s9, %s2112_s5  }
  0x3e   : > { %s226_s14 = scalar_lea.vmem [#allocation7], %s1752_s12  ;;  %s1633_s11 = smov [#allocation7]  }
  0x3f   : > { %s236_s26 = sshll.u32 %s226_s14, 4  ;;  %s1556_s28 = sshll.u32 %s1633_s11, 4  ;;  %s237_s26 = int_to_ptr.vmem [resolvable:$true] %s236_s26  ;;  %s1557_s28 = int_to_ptr.vmem [resolvable:$false] %s1556_s28 }
  0x40   : > { %s1551_s13 = scalar_lea.vmem %s237_s26, 1024  ;;  %s1558_s22 = scalar_lea.vmem %s1557_s28, 2048 }
  0x41   : > { %p1552_p13 = scmp.ne.s32.totalorder %s237_s26, %s1551_s13  ;;  %p1559_p0 = scmp.lt.s32.totalorder %s237_s26, %s1557_s28 }
  0x42   : > { %p1560_p1 = scmp.lt.s32.totalorder %s1558_s22, %s1551_s13 }
  0x43   : > { %p1554_p4 = pnand %p1552_p13, %p1486_p10 }
  0x44   : > { %p1561_p2 = por %p1560_p1, %p1559_p0 }
  0x45   : > { %p1555_p6 = pneg %p1554_p4 }
  0x47   : > { %p1562_p5 = pnand %p1561_p2, %p1555_p6 }
  0x49   : > { %1565 = shalt.err (!%p1562_p5)
}
  0x4a   : > { %s2114_s12 = smov 128   ;;  %248 = sbr.rel (%p1717_p8) target bundleno = 1014 (0x3f6), region = 36 }
  0x4b   : > { %1297 = dma.hbm_to_vmem [thread:$0]  (!%p1730_p12), %s1782_s6, 1024, %s237_s26, %s1766_s21, %s2114_s12, %s2114_s12, %s1631_s10  }
  0x4f   : > { %1591 = dma.done.wait (%p1705_p3), [#allocation3], 128  }
  0x50   : > { %1593 = vsyncadd (%p1705_p3), [#allocation3], 4294967168 }
  0x51   : > { %1595 = dma.done.wait (%p1705_p3), [#allocation5], 128  }
  0x52   : > { %1597 = vsyncadd (%p1705_p3), [#allocation5], 4294967168  ;;  %s2115_s29 = sadd.s32 4294967295, %s1624_s20   ;;  %s260_s22 = sand.u32 1, %s1608_s16  }
  0x53   : > { %s258_s21 = sand.u32 1, %s2115_s29   ;;  %s1165_s25 = sshll.u32 %s260_s22, 6 }
  0x54   : > { %s259_s10 = scalar_lea.sflag [#allocation3], %s258_s21  ;;  %s1819_s8 = scalar_lea.vmem [#allocation6], %s1165_s25 }
  0x55   : > { %p2116_p8 = scmp.ne.s32.totalorder %s2108_s24, 0 }
  0x57   : > { %1599 = dma.done.wait (%p2116_p8), %s259_s10, 2048  }
  0x58   : > { %1601 = vsyncadd (%p2116_p8), %s259_s10, 4294965248  ;;  %v1452_v0 = vld [vmem:[#allocation4] sm:$0xff]   ;;  %v1826_v1 = vld [vmem:[%s1819_s8] sm:$0xff]  ;;  %s1831_s23 = scalar_lea.vmem [#allocation7], %s1165_s25  ;;  %vm355_vm0 = vcmask 130048   ;;  %s1634_s24 = smov 16  }
  0x59   : > { %v1829_v2 = vld [vmem:[%s1819_s8 + $0x8] sm:$0xff]  ;;  %v1834_v3 = vld [vmem:[%s1831_s23] sm:$0xff]  ;;  %1218 = vmatprep.subr.bf16.mxu0 %v1452_v0  ;;  %v1844_v7 = vld [vmem:[%s1819_s8 + $0x10] sm:$0xff]  ;;  %1266 = vmatprep.subr.bf16.mxu1 %v1452_v0  ;;  %v381_v46 = vmul.f32 %v1826_v1, %v1826_v1  ;;  %s1635_s6 = smov 80   ;;  %s1636_s5 = smov 48   ;;  %vm798_vm1 = vcmask 261120  }
  0x5a   : > { %v1837_v4 = vld [vmem:[%s1831_s23 + $0x8] sm:$0xff]  ;;  %v331_v5 = vsub.f32 %v1826_v1, %v1834_v3  ;;  %v405_v6 = vpack.c.bf16 %v1829_v2, %v1826_v1  ;;  %v1847_v8 = vld [vmem:[%s1819_s8 + $0x18] sm:$0xff]  ;;  %v389_v9 = vmul.f32 %v1834_v3, %v1834_v3  ;;  %1219 = vmatpush3.bf16.msra.mxu0 %v1452_v0  ;;  %v1856_v12 = vld [vmem:[%s1819_s8 + $0x20] sm:$0xff]  ;;  %1267 = vmatpush3.bf16.msra.mxu1 %v1452_v0  ;;  %s1637_s9 = smov 64   ;;  %s1638_s15 = smov 32   ;;  %vm801_vm2 = vcmask 392192  }
  0x5b   : > { %v332_v10 = vsub.f32 %v1829_v2, %v1837_v4  ;;  %v406_v11 = vpack.c.bf16 %v1847_v8, %v1844_v7  ;;  %v1859_v13 = vld [vmem:[%s1819_s8 + $0x28] sm:$0xff]  ;;  %v1865_v15 = vld [vmem:[%s1831_s23 + $0x10] sm:$0xff]  ;;  %v1868_v16 = vld [vmem:[%s1831_s23 + $0x18] sm:$0xff]  ;;  %v390_v17 = vmul.f32 %v1837_v4, %v1837_v4  ;;  %v409_v34 = vpack.c.bf16 %v1837_v4, %v1834_v3  ;;  %s1639_s7 = smov 96   ;;  %s1641_s14 = smov 112  }
  0x5c   : > { %1220 = vmatprep.mubr.msk.bf16.mxu0 %vm355_vm0, %v405_v6  ;;  %v407_v14 = vpack.c.bf16 %v1859_v13, %v1856_v12  ;;  %v391_v18 = vmul.f32 %v1865_v15, %v1865_v15  ;;  %v1875_v19 = vld [vmem:[%s1831_s23 + $0x20] sm:$0xff]  ;;  %v1878_v20 = vld [vmem:[%s1831_s23 + $0x28] sm:$0xff]  ;;  %v1882_v21 = vld [vmem:[%s1819_s8 + $0x30] sm:$0xff]  ;;  %v392_v23 = vmul.f32 %v1868_v16, %v1868_v16  ;;  %v397_v35 = vmul.f32 %v1834_v3, %v1826_v1  ;;  %p304_p3 = scmp.lt.s32.totalorder %s1616_s18, 1 }
  0x5d   : > { %1221 = vmatmul.mubr.msk.bf16.vlgmr.msra.gmra.mxu0 %vm355_vm0, %v406_v11  ;;  %v417_v22 = vpack.c.bf16 %v390_v17, %v389_v9  ;;  %v1888_v24 = vld [vmem:[%s1819_s8 + $0x38] sm:$0xff]  ;;  %v1891_v25 = vld [vmem:[%s1831_s23 + $0x30] sm:$0xff]  ;;  %v393_v27 = vmul.f32 %v1875_v19, %v1875_v19  ;;  %v394_v28 = vmul.f32 %v1878_v20, %v1878_v20  ;;  %v398_v36 = vmul.f32 %v1837_v4, %v1829_v2 }
  0x5e   : > { %1224 = vmatprep.mubr.msk.bf16.mxu0 %vm355_vm0, %v407_v14  ;;  %v1894_v26 = vld [vmem:[%s1831_s23 + $0x38] sm:$0xff]  ;;  %v418_v29 = vpack.c.bf16 %v392_v23, %v391_v18  ;;  %v408_v31 = vpack.c.bf16 %v1888_v24, %v1882_v21  ;;  %v395_v32 = vmul.f32 %v1891_v25, %v1891_v25  ;;  %v410_v39 = vpack.c.bf16 %v1868_v16, %v1865_v15  ;;  %s2125_s18 = smov (!%p304_p3, %s1616_s18), 1 }
  0x5f   : > { %1244 = vmatprep.mubr.msk.bf16.mxu1 %vm355_vm0, %v417_v22  ;;  %v419_v30 = vpack.c.bf16 %v394_v28, %v393_v27  ;;  %v396_v33 = vmul.f32 %v1894_v26, %v1894_v26  ;;  %v421_v38 = vpack.c.bf16 %v398_v36, %v397_v35  ;;  %v399_v40 = vmul.f32 %v1865_v15, %v1844_v7  ;;  %s309_s12 = scalar_lea.vmem %s2101_s4, %s2125_s18 }
  0x60   : > { %1245 = vmatmul.mubr.msk.bf16.vlgmr.msra.gmra.mxu1 %vm355_vm0, %v418_v29  ;;  %v400_v41 = vmul.f32 %v1868_v16, %v1847_v8  ;;  %v411_v42 = vpack.c.bf16 %v1878_v20, %v1875_v19  ;;  %v401_v43 = vmul.f32 %v1875_v19, %v1856_v12  ;;  %v402_v44 = vmul.f32 %v1878_v20, %v1859_v13 }
  0x61   : > { %1248 = vmatprep.mubr.msk.bf16.mxu1 %vm355_vm0, %v419_v30  ;;  %v420_v37 = vpack.c.bf16 %v396_v33, %v395_v32  ;;  %v382_v47 = vmul.f32 %v1829_v2, %v1829_v2  ;;  %v412_v49 = vpack.c.bf16 %v1894_v26, %v1891_v25  ;;  %v403_v50 = vmul.f32 %v1891_v25, %v1882_v21 }
  0x62   : > { %v422_v45 = vpack.c.bf16 %v400_v41, %v399_v40  ;;  %v423_v48 = vpack.c.bf16 %v402_v44, %v401_v43  ;;  %v404_v51 = vmul.f32 %v1894_v26, %v1888_v24  ;;  %v383_v53 = vmul.f32 %v1844_v7, %v1844_v7 }
  0x63   : > { %v413_v52 = vpack.c.bf16 %v382_v47, %v381_v46  ;;  %v384_v54 = vmul.f32 %v1847_v8, %v1847_v8  ;;  %v385_v56 = vmul.f32 %v1856_v12, %v1856_v12  ;;  %v386_v57 = vmul.f32 %v1859_v13, %v1859_v13 }
  0x64   : > { %v424_v55 = vpack.c.bf16 %v404_v51, %v403_v50  ;;  %v387_v60 = vmul.f32 %v1882_v21, %v1882_v21  ;;  %v388_v61 = vmul.f32 %v1888_v24, %v1888_v24  ;;  %vm804_vm3 = vcmask 523264  }
  0x65   : > { %1225 = vmatmul.mubr.msk.bf16.gmra.mxu0 %vm355_vm0, %v408_v31  ;;  %v414_v58 = vpack.c.bf16 %v384_v54, %v383_v53  ;;  %v415_v59 = vpack.c.bf16 %v386_v57, %v385_v56  ;;  %vm810_vm4 = vcmask 785408   ;;  %vm807_vm5 = vcmask 654336  }
  0x66   : > { %1228 = vmatprep.mubr.msk.bf16.mxu0 %vm355_vm0, %v409_v34  ;;  %v416_v62 = vpack.c.bf16 %v388_v61, %v387_v60  ;;  %vm813_vm6 = vcmask 916480   ;;  %vm1643_vm7 = vmmov 0   ;;  %vm1026_vm8 = vcmask 0  }
  0x68   : > { %1249 = vmatmul.mubr.msk.bf16.gmra.mxu1 %vm355_vm0, %v420_v37 }
  0x69   : > { %1252 = vmatprep.mubr.msk.bf16.mxu1 %vm355_vm0, %v421_v38 }
  0x6d   : > { %1229 = vmatmul.mubr.msk.bf16.gmra.mxu0 %vm355_vm0, %v410_v39 }
  0x6e   : > { %1232 = vmatprep.mubr.msk.bf16.mxu0 %vm355_vm0, %v411_v42 }
  0x70   : > { %1253 = vmatmul.mubr.msk.bf16.gmra.mxu1 %vm355_vm0, %v422_v45 }
  0x71   : > { %1256 = vmatprep.mubr.msk.bf16.mxu1 %vm355_vm0, %v423_v48 }
  0x75   : > { %1233 = vmatmul.mubr.msk.bf16.gmra.mxu0 %vm355_vm0, %v412_v49 }
  0x76   : > { %1236 = vmatprep.mubr.msk.bf16.mxu0 %vm355_vm0, %v413_v52 }
  0x78   : > { %1257 = vmatmul.mubr.msk.bf16.gmra.mxu1 %vm355_vm0, %v424_v55 }
  0x7d   : > { %1237 = vmatmul.mubr.msk.bf16.gmra.mxu0 %vm355_vm0, %v414_v58 }
  0x7e   : > { %1240 = vmatprep.mubr.msk.bf16.mxu0 %vm355_vm0, %v415_v59 }
  0x85   : > { %1241 = vmatmul.mubr.msk.bf16.gmra.mxu0 %vm355_vm0, %v416_v62 }
 0x11d   : > { %v1222_v63 = vpop.f32.mrf.mxu0 }
 0x11f   : > { %v1963_v0 = vpop.f32.mrf.mxu0 }
 0x120   : > { %v1246_v9 = vpop.f32.mrf.mxu1 }
 0x121   : > { %v1223_v6 = vpop.f32.mrf.mxu0 }
 0x122   : > { %v1367_v11 = vpack.i.bf16 %v1223_v6, %v1222_v63  ;;  %v621_v17 = vpop.f32.mrf.mxu1 }
 0x123   : > { %v1965_v14 = vpop.f32.mrf.mxu0 }
 0x124   : > { %1368 = vrot.lane.b32.xlu0 %v1367_v11, %s1634_s24  ;;  %v1247_v22 = vpop.f32.mrf.mxu1 }
 0x125   : > { %v1226_v18 = vpop.f32.mrf.mxu0  ;;  %v1372_v23 = vpack.i.bf16 %v1247_v22, %v1246_v9 }
 0x126   : > { %v624_v28 = vpop.f32.mrf.mxu1 }
 0x127   : > { %v541_v27 = vpop.f32.mrf.mxu0  ;;  %v1377_v29 = vpack.i.bf16 %v624_v28, %v621_v17 }
 0x128   : > { %1373 = vrot.lane.b32.xlu0 %v1372_v23, %s1635_s6  ;;  %v1250_v31 = vpop.f32.mrf.mxu1 }
 0x129   : > { %v1227_v30 = vpop.f32.mrf.mxu0 }
 0x12a   : > { %v1382_v32 = vpack.i.bf16 %v1227_v30, %v1226_v18  ;;  %v637_v34 = vpop.f32.mrf.mxu1  ;;  %v1640_v18 = vmov 0  }
 0x12b   : > { %v544_v33 = vpop.f32.mrf.mxu0  ;;  %903 = vmatprep.mubr.bf16.mxu1 %v1640_v18 }
 0x12c   : > { %1383 = vrot.lane.b32.xlu1 %v1382_v32, %s1636_s5  ;;  %1378 = vrot.lane.b32.xlu0 %v1377_v29, %s1637_s9  ;;  %v1251_v36 = vpop.f32.mrf.mxu1  ;;  %v1387_v37 = vpack.i.bf16 %v544_v33, %v541_v27 }
 0x12d   : > { %v1230_v35 = vpop.f32.mrf.mxu0  ;;  %v1427_v11 = vpack.i.bf16 %v1251_v36, %v1250_v31 }
 0x12e   : > { %v640_v39 = vpop.f32.mrf.mxu1 }
 0x12f   : > { %v557_v38 = vpop.f32.mrf.mxu0  ;;  %v1392_v40 = vpack.i.bf16 %v640_v39, %v637_v34 }
 0x130   : > { %1388 = vrot.lane.b32.xlu1 %v1387_v37, %s1638_s15  ;;  %v1254_v47 = vpop.f32.mrf.mxu1 }
 0x131   : > { %v1231_v41 = vpop.f32.mrf.mxu0  ;;  %1393 = vrot.lane.b32.xlu0 %v1392_v40, %s1639_s7 }
 0x132   : > { %v1397_v42 = vpack.i.bf16 %v1231_v41, %v1230_v35  ;;  %v1973_v50 = vpop.f32.mrf.mxu1 }
 0x133   : > { %v560_v43 = vpop.f32.mrf.mxu0 }
 0x134   : > { %1398 = vrot.lane.b32.xlu1 %v1397_v42, %s1635_s6  ;;  %v1402_v45 = vpack.i.bf16 %v560_v43, %v557_v38  ;;  %v1255_v53 = vpop.f32.mrf.mxu1 }
 0x135   : > { %v1234_v44 = vpop.f32.mrf.mxu0  ;;  %v1437_v23 = vpack.i.bf16 %v1255_v53, %v1254_v47 }
 0x136   : > { %v1979_v57 = vpop.f32.mrf.mxu1 }
 0x137   : > { %v573_v46 = vpop.f32.mrf.mxu0 }
 0x138   : > { %1403 = vrot.lane.b32.xlu1 %v1402_v45, %s1637_s9  ;;  %v1258_v60 = vpop.f32.mrf.mxu1 }
 0x139   : > { %v1235_v48 = vpop.f32.mrf.mxu0 }
 0x13a   : > { %v669_v6 = vpop.f32.mrf.mxu1  ;;  %v1432_v28 = vpack.i.bf16 %v1235_v48, %v1234_v44 }
 0x13b   : > { %v576_v49 = vpop.f32.mrf.mxu0 }
 0x13c   : > { %v1259_v17 = vpop.f32.mrf.mxu1  ;;  %v1422_v22 = vpack.i.bf16 %v576_v49, %v573_v46 }
 0x13d   : > { %v1238_v51 = vpop.f32.mrf.mxu0  ;;  %v1447_v29 = vpack.i.bf16 %v1259_v17, %v1258_v60 }
 0x13e   : > { %v672_v27 = vpop.f32.mrf.mxu1 }
 0x13f   : > { %v1975_v52 = vpop.f32.mrf.mxu0  ;;  %v1442_v30 = vpack.i.bf16 %v672_v27, %v669_v6 }
 0x141   : > { %v1239_v54 = vpop.f32.mrf.mxu0 }
 0x142   : > { %v1407_v55 = vpack.i.bf16 %v1239_v54, %v1238_v51 }
 0x143   : > { %v1977_v56 = vpop.f32.mrf.mxu0 }
 0x144   : > { %1408 = vrot.lane.b32.xlu0 %v1407_v55, %s1634_s24 }
 0x145   : > { %v1242_v58 = vpop.f32.mrf.mxu0 }
 0x147   : > { %v605_v59 = vpop.f32.mrf.mxu0 }
 0x149   : > { %v1243_v61 = vpop.f32.mrf.mxu0 }
 0x14a   : > { %v1412_v62 = vpack.i.bf16 %v1243_v61, %v1242_v58 }
 0x14b   : > { %v608_v63 = vpop.f32.mrf.mxu0 }
 0x14c   : > { %v1417_v9 = vpack.i.bf16 %v608_v63, %v605_v59  ;;  %1413 = vrot.lane.b32.xlu0 %v1412_v62, %s1636_s5 }
 0x14e   : > { %1418 = vrot.lane.b32.xlu1 %v1417_v9, %s1638_s15 }
 0x150   : > { %1428 = vrot.lane.b32.xlu0 %v1427_v11, %s1641_s14 }
 0x152   : > { %1423 = vrot.lane.b32.xlu1 %v1422_v22, %s1639_s7 }
 0x154   : > { %1438 = vrot.lane.b32.xlu0 %v1437_v23, %s1634_s24 }
 0x156   : > { %1433 = vrot.lane.b32.xlu1 %v1432_v28, %s1641_s14 }
 0x158   : > { %1448 = vrot.lane.b32.xlu0 %v1447_v29, %s1636_s5 }
 0x15a   : > { %1443 = vrot.lane.b32.xlu1 %v1442_v30, %s1638_s15 }
 0x196   : > { %v1369_v31 = vpop.permute.xlu0 %1368 }
 0x197   : > { %v1371_v38 = vunpack.i.h.bf16 %v1369_v31  ;;  %v1370_v39 = vunpack.i.l.bf16 %v1369_v31 }
 0x199   : > { %v796_v44 = vsel %vm355_vm0, %v1963_v0, %v1370_v39  ;;  %v797_v45 = vsel %vm355_vm0, %v1965_v14, %v1371_v38 }
 0x19a   : > { %v1374_v32 = vpop.permute.xlu0 %1373 }
 0x19b   : > { %v1376_v46 = vunpack.i.h.bf16 %v1374_v32  ;;  %v1375_v48 = vunpack.i.l.bf16 %v1374_v32 }
 0x19e   : > { %v1384_v33 = vpop.permute.xlu1 %1383  ;;  %v1379_v34 = vpop.permute.xlu0 %1378 }
 0x19f   : > { %v1386_v54 = vunpack.i.h.bf16 %v1384_v33  ;;  %v1385_v55 = vunpack.i.l.bf16 %v1384_v33  ;;  %v1381_v58 = vunpack.i.h.bf16 %v1379_v34  ;;  %v1380_v59 = vunpack.i.l.bf16 %v1379_v34 }
 0x1a2   : > { %v1389_v35 = vpop.permute.xlu1 %1388 }
 0x1a3   : > { %v1394_v36 = vpop.permute.xlu0 %1393  ;;  %v1390_v40 = vunpack.i.l.bf16 %v1389_v35  ;;  %v1391_v42 = vunpack.i.h.bf16 %v1389_v35 }
 0x1a4   : > { %v1396_v62 = vunpack.i.h.bf16 %v1394_v36  ;;  %v1395_v6 = vunpack.i.l.bf16 %v1394_v36 }
 0x1a5   : > { %v799_v47 = vsel %vm798_vm1, %v796_v44, %v1390_v40  ;;  %v800_v60 = vsel %vm798_vm1, %v797_v45, %v1391_v42 }
 0x1a6   : > { %v1988_v37 = vpop.permute.xlu1 %1398  ;;  %v802_v14 = vsel %vm801_vm2, %v799_v47, %v1385_v55  ;;  %v803_v29 = vsel %vm801_vm2, %v800_v60, %v1386_v54 }
 0x1a7   : > { %v1400_v28 = vunpack.i.l.bf16 %v1988_v37  ;;  %v1401_v45 = vunpack.i.h.bf16 %v1988_v37 }
 0x1aa   : > { %v1404_v43 = vpop.permute.xlu1 %1403 }
 0x1ab   : > { %v1406_v61 = vunpack.i.h.bf16 %v1404_v43  ;;  %v1405_v0 = vunpack.i.l.bf16 %v1404_v43 }
 0x1ad   : > { %v806_v32 = vsel %vm804_vm3, %v803_v29, %v1406_v61  ;;  %v805_v33 = vsel %vm804_vm3, %v802_v14, %v1405_v0 }
 0x1b6   : > { %v1409_v41 = vpop.permute.xlu0 %1408 }
 0x1b7   : > { %v1411_v49 = vunpack.i.h.bf16 %v1409_v41  ;;  %v1410_v51 = vunpack.i.l.bf16 %v1409_v41 }
 0x1b9   : > { %v816_v17 = vsel %vm355_vm0, %v1975_v52, %v1410_v51  ;;  %v817_v18 = vsel %vm355_vm0, %v1977_v56, %v1411_v49  ;;  %v808_v51 = vsel %vm807_vm5, %v805_v33, %v1400_v28 }
 0x1be   : > { %v1414_v53 = vpop.permute.xlu0 %1413 }
 0x1bf   : > { %v1416_v22 = vunpack.i.h.bf16 %v1414_v53  ;;  %v1415_v23 = vunpack.i.l.bf16 %v1414_v53 }
 0x1c0   : > { %v1419_v63 = vpop.permute.xlu1 %1418 }
 0x1c1   : > { %v1421_v9 = vunpack.i.h.bf16 %v1419_v63  ;;  %v1420_v11 = vunpack.i.l.bf16 %v1419_v63 }
 0x1c2   : > { %v1429_v27 = vpop.permute.xlu0 %1428 }
 0x1c3   : > { %v819_v30 = vsel %vm798_vm1, %v817_v18, %v1421_v9  ;;  %v818_v31 = vsel %vm798_vm1, %v816_v17, %v1420_v11  ;;  %v1431_v38 = vunpack.i.h.bf16 %v1429_v27  ;;  %v1430_v39 = vunpack.i.l.bf16 %v1429_v27  ;;  %v1453_v18 = vld [vmem:[#allocation2] sm:$0xff]  }
 0x1c4   : > { %v821_v52 = vsel %vm801_vm2, %v819_v30, %v1416_v22  ;;  %v820_v34 = vsel %vm801_vm2, %v818_v31, %v1415_v23  ;;  %v1424_v56 = vpop.permute.xlu1 %1423  ;;  %v1642_v31 = vmov 0.0  }
 0x1c5   : > { %v823_v35 = vsel %vm804_vm3, %v821_v52, %v1381_v58  ;;  %v822_v36 = vsel %vm804_vm3, %v820_v34, %v1380_v59  ;;  %v1426_v40 = vunpack.i.h.bf16 %v1424_v56  ;;  %v1425_v41 = vunpack.i.l.bf16 %v1424_v56 }
 0x1c6   : > { %v824_v42 = vsel %vm807_vm5, %v822_v36, %v1375_v48  ;;  %v825_v43 = vsel %vm807_vm5, %v823_v35, %v1376_v46  ;;  %v1439_v44 = vpop.permute.xlu0 %1438  ;;  %v809_v58 = vsel %vm807_vm5, %v806_v32, %v1401_v45  ;;  %v334_v45 = vsub.f32 %v1847_v8, %v1868_v16 }
 0x1c7   : > { %v826_v47 = vsel %vm810_vm4, %v824_v42, %v1395_v6  ;;  %v827_v49 = vsel %vm810_vm4, %v825_v43, %v1396_v62  ;;  %v812_v46 = vsel %vm810_vm4, %v809_v58, %v1426_v40  ;;  %v811_v37 = vsel %vm810_vm4, %v808_v51, %v1425_v41 }
 0x1c8   : > { %v1434_v53 = vpop.permute.xlu1 %1433  ;;  %v828_v54 = vsel %vm813_vm6, %v826_v47, %v1430_v39  ;;  %v829_v55 = vsel %vm813_vm6, %v827_v49, %v1431_v38  ;;  %v1441_v61 = vunpack.i.h.bf16 %v1439_v44  ;;  %v1440_v0 = vunpack.i.l.bf16 %v1439_v44 }
 0x1c9   : > { %v1436_v59 = vunpack.i.h.bf16 %v1434_v53  ;;  %v1435_v48 = vunpack.i.l.bf16 %v1434_v53  ;;  %v861_v60 = vpack.c.bf16 %v829_v55, %v828_v54  ;;  %v335_v51 = vsub.f32 %v1856_v12, %v1875_v19 }
 0x1ca   : > { %v1449_v63 = vpop.permute.xlu0 %1448  ;;  %v855_v27 = vsel %vm355_vm0, %v1979_v57, %v1441_v61  ;;  %v854_v28 = vsel %vm355_vm0, %v1973_v50, %v1440_v0  ;;  %v339_v50 = vand.u32 2147483647, %v331_v5  ;;  %v340_v57 = vand.u32 2147483647, %v332_v10 }
 0x1cb   : > { %v814_v62 = vsel %vm813_vm6, %v811_v37, %v1435_v48  ;;  %v815_v14 = vsel %vm813_vm6, %v812_v46, %v1436_v59  ;;  %885 = vmatprep.subr.bf16.mxu1 %v861_v60  ;;  %v1451_v11 = vunpack.i.h.bf16 %v1449_v63  ;;  %v1450_v17 = vunpack.i.l.bf16 %v1449_v63 }
 0x1cc   : > { %v860_v6 = vpack.c.bf16 %v815_v14, %v814_v62  ;;  %v1444_v9 = vpop.permute.xlu1 %1443  ;;  %v347_v34 = vmul.f32 2.0, %v339_v50  ;;  %v348_v56 = vmul.f32 2.0, %v340_v57  ;;  %v333_v5 = vsub.f32 %v1844_v7, %v1865_v15 }
 0x1cd   : > { %v1446_v22 = vunpack.i.h.bf16 %v1444_v9  ;;  %v1445_v23 = vunpack.i.l.bf16 %v1444_v9  ;;  %v342_v53 = vand.u32 2147483647, %v334_v45  ;;  %v336_v15 = vsub.f32 %v1859_v13, %v1878_v20 }
 0x1ce   : > { %886 = vmatpush1.bf16.msra.mxu1 %v860_v6  ;;  %v356_v35 = vsel %vm355_vm0, %v347_v34, 0.0  ;;  %v357_v36 = vsel %vm355_vm0, %v348_v56, 0.0  ;;  %v341_v47 = vand.u32 2147483647, %v333_v5  ;;  %v343_v54 = vand.u32 2147483647, %v335_v51 }
 0x1cf   : > { %v857_v29 = vsel %vm798_vm1, %v855_v27, %v1446_v22  ;;  %v856_v30 = vsel %vm798_vm1, %v854_v28, %v1445_v23  ;;  %1260 = vmatprep.subr.bf16.mxu1 %v1642_v31  ;;  %v358_v41 = vadd.f32 %v357_v36, %v356_v35  ;;  %v350_v55 = vmul.f32 2.0, %v342_v53 }
 0x1d0   : > { %v858_v32 = vsel %vm801_vm2, %v856_v30, %v1450_v17  ;;  %v859_v33 = vsel %vm801_vm2, %v857_v29, %v1451_v11  ;;  %v349_v7 = vmul.f32 2.0, %v341_v47  ;;  %v337_v8 = vsub.f32 %v1882_v21, %v1891_v25 }
 0x1d1   : > { %1189 = vmatmul.mubr.msk.bf16.vlgmr.msra.gmra.mxu1 %vm355_vm0, %v1453_v18  ;;  %v862_v52 = vpack.c.bf16 %v859_v33, %v858_v32  ;;  %v344_v16 = vand.u32 2147483647, %v336_v15  ;;  %v351_v48 = vmul.f32 2.0, %v343_v54  ;;  %v361_v60 = vsel %vm355_vm0, %v350_v55, 0.0 }
 0x1d2   : > { %1262 = vmatprep.mubr.msk.bf16.mxu1 %vm1643_vm7, %v1642_v31  ;;  %v359_v58 = vsel %vm355_vm0, %v349_v7, 0.0  ;;  %v338_v12 = vsub.f32 %v1888_v24, %v1894_v26  ;;  %v345_v19 = vand.u32 2147483647, %v337_v8 }
 0x1d3   : > { %1261 = vmatpush3.bf16.msra.mxu1 %v862_v52  ;;  %v360_v59 = vadd.f32 %v359_v58, %v358_v41  ;;  %v352_v37 = vmul.f32 2.0, %v344_v16  ;;  %v363_v13 = vsel %vm355_vm0, %v351_v48, 0.0 }
 0x1d4   : > { %v346_v61 = vand.u32 2147483647, %v338_v12  ;;  %v353_v0 = vmul.f32 2.0, %v345_v19 }
 0x1d5   : > { %v362_v46 = vadd.f32 %v361_v60, %v360_v59  ;;  %v365_v63 = vsel %vm355_vm0, %v352_v37, 0.0 }
 0x1d6   : > { %v354_v14 = vmul.f32 2.0, %v346_v61  ;;  %v367_v21 = vsel %vm355_vm0, %v353_v0, 0.0 }
 0x1d7   : > { %v364_v20 = vadd.f32 %v363_v13, %v362_v46 }
 0x1d8   : > { %v369_v6 = vsel %vm355_vm0, %v354_v14, 0.0 }
 0x1d9   : > { %1263 = vmatmul.mubr.msk.bf16.vlgmr.msra.gmra.mxu1 %vm355_vm0, %v1453_v18  ;;  %v366_v62 = vadd.f32 %v365_v63, %v364_v20 }
 0x1db   : > { %v368_v25 = vadd.f32 %v367_v21, %v366_v62 }
 0x1dd   : > { %v370_v9 = vadd.f32 %v369_v6, %v368_v25 }
 0x291   : > { %v905_v38 = vpop.f32.mrf.mxu1 }
 0x292   : > { %v955_v39 = vmul.f32 %v905_v38, %v905_v38 }
 0x293   : > { %v907_v40 = vpop.f32.mrf.mxu1 }
 0x294   : > { %983 = vrot.lane.b32.xlu1 %v955_v39, %s1637_s9  ;;  %v967_v1 = vsub.f32 %v907_v40, %v955_v39 }
 0x295   : > { %v2043_v42 = vpop.f32.mrf.mxu1 }
 0x296   : > { %v956_v3 = vmul.f32 %v2043_v42, %v2043_v42 }
 0x297   : > { %v911_v2 = vpop.f32.mrf.mxu1 }
 0x298   : > { %995 = vrot.lane.b32.xlu1 %v967_v1, %s1637_s9  ;;  %985 = vrot.lane.b32.xlu0 %v956_v3, %s1637_s9  ;;  %v968_v10 = vsub.f32 %v911_v2, %v956_v3 }
 0x299   : > { %v948_v4 = vpop.f32.mrf.mxu1 }
 0x29b   : > { %v1264_v43 = vpop.f32.mrf.mxu1 }
 0x29c   : > { %959 = vrot.lane.b32.xlu1 %v905_v38, %s1637_s9  ;;  %997 = vrot.lane.b32.xlu0 %v968_v10, %s1637_s9 }
 0x29d   : > { %v951_v44 = vpop.f32.mrf.mxu1 }
 0x29f   : > { %v1265_v49 = vpop.f32.mrf.mxu1 }
 0x2a0   : > { %961 = vrot.lane.b32.xlu0 %v2043_v42, %s1637_s9 }
 0x2c0   : > { %371 = vadd.xlane.f32.xlu1 %v370_v9 }
 0x306   : > { %v984_v11 = vpop.permute.xlu1 %983 }
 0x307   : > { %v989_v24 = vadd.f32 %v984_v11, %v955_v39 }
 0x309   : > { %v991_v22 = vadd.f32 0.0001, %v989_v24 }
 0x30a   : > { %v996_v26 = vpop.permute.xlu1 %995  ;;  %v986_v17 = vpop.permute.xlu0 %985 }
 0x30b   : > { %v1001_v18 = vadd.f32 %v996_v26, %v967_v1  ;;  %v990_v27 = vadd.f32 %v986_v17, %v956_v3 }
 0x30d   : > { %v1003_v23 = vadd.f32 0.0009, %v1001_v18  ;;  %v992_v33 = vadd.f32 0.0001, %v990_v27 }
 0x30e   : > { %v960_v28 = vpop.permute.xlu1 %959  ;;  %v998_v29 = vpop.permute.xlu0 %997 }
 0x30f   : > { %v1005_v30 = vmul.f32 %v1003_v23, %v991_v22  ;;  %v965_v31 = vmul.f32 %v960_v28, %v905_v38  ;;  %v1002_v32 = vadd.f32 %v998_v29, %v968_v10 }
 0x311   : > { %1454 = vrcp.f32 %v1005_v30  ;;  %v1004_v52 = vadd.f32 0.0009, %v1002_v32  ;;  %v969_v34 = vsub.f32 %v948_v4, %v965_v31  ;;  %v971_v39 = vmul.f32 2.0, %v965_v31 }
 0x312   : > { %v962_v50 = vpop.permute.xlu0 %961 }
 0x313   : > { %v1006_v57 = vmul.f32 %v1004_v52, %v992_v33  ;;  %v966_v56 = vmul.f32 %v962_v50, %v2043_v42  ;;  %v975_v36 = vmul.f32 2.0, %v969_v34  ;;  %v973_v3 = vadd.f32 0.0001, %v971_v39 }
 0x315   : > { %1456 = vrcp.f32 %v1006_v57  ;;  %v970_v35 = vsub.f32 %v951_v44, %v966_v56  ;;  %v977_v41 = vadd.f32 0.0009, %v975_v36  ;;  %v972_v1 = vmul.f32 2.0, %v966_v56 }
 0x317   : > { %v976_v40 = vmul.f32 2.0, %v970_v35  ;;  %v979_v38 = vmul.f32 %v977_v41, %v973_v3  ;;  %v974_v10 = vadd.f32 0.0001, %v972_v1 }
 0x319   : > { %v978_v2 = vadd.f32 0.0009, %v976_v40 }
 0x31b   : > { %v980_v43 = vmul.f32 %v978_v2, %v974_v10 }
 0x31e   : > { %v1455_v5 = vpop.eup %1454 }
 0x31f   : > { %v1009_v45 = vmul.f32 %v1455_v5, %v979_v38 }
 0x321   : > { %v1011_v4 = vsel %vm804_vm3, %v1009_v45, 0.0 }
 0x322   : > { %v1457_v47 = vpop.eup %1456 }
 0x323   : > { %v1010_v49 = vmul.f32 %v1457_v47, %v980_v43 }
 0x325   : > { %v1012_v42 = vsel %vm804_vm3, %v1010_v49, 0.0 }
 0x326   : > { %v1013_v51 = vadd.f32 %v1012_v42, %v1011_v4 }
 0x328   : > { %1014 = vadd.xlane.f32.xlu0 %v1013_v51 }
 0x349   : > { %v372_v44 = vpop.xlane.xlu1 %371 }
 0x34a   : > { %v373_v53 = vrot.slane %v372_v44, 4 }
 0x34c   : > { %v374_v7 = vadd.f32 %v373_v53, %v372_v44 }
 0x34e   : > { %v375_v15 = vrot.slane %v374_v7, 2 }
 0x350   : > { %v376_v54 = vadd.f32 %v375_v15, %v374_v7 }
 0x352   : > { %v377_v55 = vrot.slane %v376_v54, 1 }
 0x354   : > { %v378_v58 = vadd.f32 %v377_v55, %v376_v54 }
 0x356   : > { %1268 = vpush %v378_v58 }
 0x387   : > { %s1269_s26 = spop %1268 }
 0x388   : > { %v380_v13 = vstv %s1269_s26 }
 0x3b1   : > { %v1015_v59 = vpop.xlane.xlu0 %1014 }
 0x3b2   : > { %v1016_v8 = vrot.slane %v1015_v59, 4 }
 0x3b4   : > { %v1017_v16 = vadd.f32 %v1016_v8, %v1015_v59 }
 0x3b6   : > { %v1018_v48 = vrot.slane %v1017_v16, 2 }
 0x3b8   : > { %v1019_v60 = vadd.f32 %v1018_v48, %v1017_v16 }
 0x3ba   : > { %v1020_v46 = vrot.slane %v1019_v60, 1 }
 0x3bc   : > { %v1021_v12 = vadd.f32 %v1020_v46, %v1019_v60 }
 0x3be   : > { %1270 = vpush %v1021_v12 }
 0x3ef   : > { %s1271_s13 = spop %1270 }
 0x3f0   : > { %v1023_v19 = vstv %s1271_s13 }
 0x3f1   : > { %v1024_v37 = vsub.f32 1024.0, %v1023_v19 }
 0x3f3   : > { %v1025_v20 = vadd.f32 %v1024_v37, %v380_v13 }
 0x3f5   : > { %1027 = vst.msk [vmem:[%s309_s12] sm:$0x1] %vm1026_vm8, %v1025_v20 }
 0x3f6 PF: > { %s16_s20 = sadd.s32 1, %s1624_s20   ;;  %s2117_s15 = smov %s1608_s16 }
 0x3f7   : > { %p13_p11 = scmp.ge.s32.totalorder %s16_s20, 4   ;;  %s2118_s16 = smov %s1612_s17 }
 0x3f8   : > { %s2119_s17 = smov %s1764_s27  ;;  %s2120_s18 = smov %s1620_s19 }
 0x3f9   : > { %s2121_s19 = smov %s2123_s30  ;;  %15 = sbr.rel (!%p13_p11) target bundleno = 4 (0x4), region = 94 }
 0x3fe   :  { %1051 = vsyncpa [#allocation3], 1 }
 0x3ff   :  { %1053 = vsyncpa [#allocation3 + $0x1], 1 }
 0x400   :  { %1054 = vsyncpa [#allocation5], 1 }

</bundles_post_ra>
